<compile_context>
chip_gen: v7x
topology: tpu7x:2x2x1
jax: 0.10.0
libtpu: 0.0.40
codegen_flags: <defaults>
</compile_context>

<pallas_src>
import functools
import math

import jax
import jax.numpy as jnp
from jax.experimental import pallas as pl
from jax.experimental.pallas import tpu as pltpu


# ---------------------------------------------------------------------------
# helpers
# ---------------------------------------------------------------------------

def _round_up(n, m):
    return ((n + m - 1) // m) * m


def _pick_tile(n, candidates=(512, 256, 128, 64, 32, 16, 8)):
    """Largest candidate tile that divides n; fall back to the full extent."""
    for c in candidates:
        if n >= c and n % c == 0:
            return c
    return n


def _pad_k(x, w):
    """Zero-pad the contraction dim of (P,K) x and (K,N) w up to a 128 multiple."""
    K = x.shape[1]
    Kp = _round_up(K, 128)
    if Kp != K:
        x = jnp.pad(x, ((0, 0), (0, Kp - K)))
        w = jnp.pad(w, ((0, Kp - K), (0, 0)))
    return x, w


# ---------------------------------------------------------------------------
# Pallas kernels
# ---------------------------------------------------------------------------

def _matmul_kernel(x_ref, w_ref, b_ref, o_ref, *, relu):
    acc = jnp.dot(x_ref[...], w_ref[...], preferred_element_type=jnp.float32)
    y = acc + b_ref[...]
    if relu:
        y = jnp.maximum(y, 0.0)
    o_ref[...] = y.astype(o_ref.dtype)


def _matmul_res_kernel(x_ref, w_ref, b_ref, r_ref, o_ref, *, relu):
    acc = jnp.dot(x_ref[...], w_ref[...], preferred_element_type=jnp.float32)
    y = acc + b_ref[...] + r_ref[...].astype(jnp.float32)
    if relu:
        y = jnp.maximum(y, 0.0)
    o_ref[...] = y.astype(o_ref.dtype)


def _dual_matmul_kernel(x1_ref, w1_ref, x2_ref, w2_ref, b_ref, o_ref):
    # conv3 + projection shortcut fused: relu(x1@w1 + x2@w2 + (b3+bs)).
    acc = jnp.dot(x1_ref[...], w1_ref[...], preferred_element_type=jnp.float32)
    acc = acc + jnp.dot(x2_ref[...], w2_ref[...],
                        preferred_element_type=jnp.float32)
    o_ref[...] = jnp.maximum(acc + b_ref[...], 0.0).astype(o_ref.dtype)


def _grouped_conv_kernel(x_ref, w_ref, b_ref, o_ref):
    # x_ref: (1, tm, 1152) bf16 K-fused patches for this 128-output-channel tile
    # w_ref: (1, 1152, 128) bf16 block-diag weight tile (BN scale folded in)
    acc = jnp.dot(x_ref[0], w_ref[0], preferred_element_type=jnp.float32)
    o_ref[...] = jnp.maximum(acc + b_ref[...], 0.0).astype(o_ref.dtype)


def _maxpool_kernel(p_ref, o_ref):
    # p_ref: (9, tp, 128) taps-major (lane-repacked) patches; reduce over taps.
    o_ref[...] = jnp.max(p_ref[...], axis=0).astype(o_ref.dtype)


def _gap_sum_kernel(f0_ref, f1_ref, o_ref, *, inv_s):
    u = f0_ref[...].astype(jnp.float32) + f1_ref[...].astype(jnp.float32)
    part = jnp.sum(u, axis=1) * inv_s                    # (B, C)

    @pl.when(pl.program_id(0) == 0)
    def _():
        o_ref[...] = jnp.zeros_like(o_ref)

    o_ref[...] += part


def _gap_kernel(x_ref, o_ref, *, inv_s):
    o_ref[...] = jnp.sum(x_ref[...].astype(jnp.float32), axis=1) * inv_s


def _sk_attn_kernel(s_ref, fcw_ref, fcb_ref, fcsw_ref, fcsb_ref, a_ref):
    # Fused SK attention tail:  z = relu(s @ fc_w + fc_b)
    #                           l = z @ [fcs0 | fcs1] + [b0 | b1]
    #                           a1 = softmax over the 2 branches = sigmoid(l1-l0)
    z = jnp.dot(s_ref[...].astype(jnp.bfloat16), fcw_ref[...],
                preferred_element_type=jnp.float32) + fcb_ref[...]
    z = jnp.maximum(z, 0.0)
    l = jnp.dot(z.astype(jnp.bfloat16), fcsw_ref[...],
                preferred_element_type=jnp.float32) + fcsb_ref[...]
    C = a_ref.shape[-1]
    d = l[:, C:] - l[:, :C]
    a_ref[...] = 1.0 / (1.0 + jnp.exp(-d))


def _sk_fuse_kernel(f0_ref, f1_ref, a_ref, o_ref):
    # v = (1-a1)*f0 + a1*f1 = f0 + a1*(f1 - f0)   (pure VPU FMA)
    f0 = f0_ref[...].astype(jnp.float32)
    f1 = f1_ref[...].astype(jnp.float32)
    o_ref[...] = (f0 + a_ref[...] * (f1 - f0)).astype(o_ref.dtype)


# ---------------------------------------------------------------------------
# Pallas wrappers
# ---------------------------------------------------------------------------

def fused_matmul(x, w, bias, *, relu=False, residual=None,
                 out_dtype=jnp.float32):
    """out = act(x @ w + bias [+ residual]); bf16 MXU operands, f32 accumulation.

    Weight-stationary: grid = (N-tiles, P-tiles) with the N-tile axis OUTER so
    the (K, tn) weight block index is constant across all inner row-tile steps
    (Pallas skips the redundant DMA).  K and N are zero-padded to multiples of
    128 for aligned loads and lane-dense stores.
    """
    P, K = x.shape
    Kw, N = w.shape
    assert K == Kw
    x = x.astype(jnp.bfloat16)
    w = w.astype(jnp.bfloat16)
    bias = bias.astype(jnp.float32).reshape(1, N)
    x, w = _pad_k(x, w)
    Kp = x.shape[1]
    Np = _round_up(N, 128)
    if Np != N:
        w = jnp.pad(w, ((0, 0), (0, Np - N)))
        bias = jnp.pad(bias, ((0, 0), (0, Np - N)))
        if residual is not None:
            residual = jnp.pad(residual, ((0, 0), (0, Np - N)))
    tm = _pick_tile(P)
    tn = _pick_tile(Np, (512, 256, 128))
    grid = (Np // tn, P // tm)                       # channel tiles OUTER

    in_specs = [
        pl.BlockSpec((tm, Kp), lambda j, i: (i, 0)),
        pl.BlockSpec((Kp, tn), lambda j, i: (0, j)),     # weight-stationary
        pl.BlockSpec((1, tn), lambda j, i: (0, j)),
    ]
    args = [x, w, bias]
    if residual is None:
        kernel = functools.partial(_matmul_kernel, relu=relu)
    else:
        kernel = functools.partial(_matmul_res_kernel, relu=relu)
        in_specs.append(pl.BlockSpec((tm, tn), lambda j, i: (i, j)))
        args.append(residual)

    out = pl.pallas_call(
        kernel,
        out_shape=jax.ShapeDtypeStruct((P, Np), out_dtype),
        grid=grid,
        in_specs=in_specs,
        out_specs=pl.BlockSpec((tm, tn), lambda j, i: (i, j)),
        compiler_params=pltpu.CompilerParams(
            dimension_semantics=("parallel", "parallel")),
    )(*args)
    if Np != N:
        out = out[:, :N]
    return out


def fused_dual_matmul(x1, w1, x2, w2, bias, *, out_dtype=jnp.bfloat16):
    """relu(x1@w1 + x2@w2 + bias): conv3 + projection shortcut in one kernel."""
    P, _ = x1.shape
    N = w1.shape[1]
    x1 = x1.astype(jnp.bfloat16)
    x2 = x2.astype(jnp.bfloat16)
    w1 = w1.astype(jnp.bfloat16)
    w2 = w2.astype(jnp.bfloat16)
    bias = bias.astype(jnp.float32).reshape(1, N)
    x1, w1 = _pad_k(x1, w1)
    x2, w2 = _pad_k(x2, w2)
    K1, K2 = x1.shape[1], x2.shape[1]
    Np = _round_up(N, 128)
    if Np != N:
        w1 = jnp.pad(w1, ((0, 0), (0, Np - N)))
        w2 = jnp.pad(w2, ((0, 0), (0, Np - N)))
        bias = jnp.pad(bias, ((0, 0), (0, Np - N)))
    tm = _pick_tile(P)
    tn = _pick_tile(Np, (512, 256, 128))
    out = pl.pallas_call(
        _dual_matmul_kernel,
        out_shape=jax.ShapeDtypeStruct((P, Np), out_dtype),
        grid=(Np // tn, P // tm),                    # weight-stationary
        in_specs=[
            pl.BlockSpec((tm, K1), lambda j, i: (i, 0)),
            pl.BlockSpec((K1, tn), lambda j, i: (0, j)),
            pl.BlockSpec((tm, K2), lambda j, i: (i, 0)),
            pl.BlockSpec((K2, tn), lambda j, i: (0, j)),
            pl.BlockSpec((1, tn), lambda j, i: (0, j)),
        ],
        out_specs=pl.BlockSpec((tm, tn), lambda j, i: (i, j)),
        compiler_params=pltpu.CompilerParams(
            dimension_semantics=("parallel", "parallel")),
    )(x1, w1, x2, w2, bias)
    if Np != N:
        out = out[:, :N]
    return out


def im2col(x, k, stride, padding, dilation, pad_value=0.0, taps_major=True):
    """Generic k*k patch extraction (used for the stem conv and the maxpool).

    taps_major=True  -> (k*k, B, Ho, Wo, C)
    taps_major=False -> (B, Ho, Wo, k*k, C)
    """
    B, H, W, C = x.shape
    xp = jnp.pad(x, ((0, 0), (padding, padding), (padding, padding), (0, 0)),
                 constant_values=pad_value)
    Hp, Wp = H + 2 * padding, W + 2 * padding
    eff = dilation * (k - 1) + 1
    Ho = (Hp - eff) // stride + 1
    Wo = (Wp - eff) // stride + 1
    patches = []
    for di in range(k):
        for dj in range(k):
            sl = xp[:, di * dilation: di * dilation + stride * (Ho - 1) + 1: stride,
                       dj * dilation: dj * dilation + stride * (Wo - 1) + 1: stride, :]
            patches.append(sl)
    cols = jnp.stack(patches, axis=0 if taps_major else 3)
    return cols, Ho, Wo


def grouped_im2col(x, stride, padding, dilation):
    """3x3 patches emitted directly in the K-fused per-tile layout.

    Returns (C//128, B*Ho*Wo, 9*128): for each 128-channel tile, rows are output
    positions and the contraction dim is (tap, channel) — exactly the layout the
    grouped-conv weight tiles use, so the kernel does ONE long-K dot per tile.
    """
    B, H, W, C = x.shape
    nt = C // 128
    xt = jnp.transpose(x.reshape(B, H, W, nt, 128), (3, 0, 1, 2, 4))
    xp = jnp.pad(xt, ((0, 0), (0, 0), (padding, padding), (padding, padding),
                      (0, 0)))
    Hp, Wp = H + 2 * padding, W + 2 * padding
    eff = dilation * 2 + 1
    Ho = (Hp - eff) // stride + 1
    Wo = (Wp - eff) // stride + 1
    taps = []
    for di in range(3):
        for dj in range(3):
            taps.append(
                xp[:, :, di * dilation: di * dilation + stride * (Ho - 1) + 1: stride,
                         dj * dilation: dj * dilation + stride * (Wo - 1) + 1: stride, :])
    cols = jnp.stack(taps, axis=4)                       # (nt, B, Ho, Wo, 9, 128)
    return cols.reshape(nt, B * Ho * Wo, 9 * 128), Ho, Wo


def grouped_conv_bn_relu(x, w_tiles, bias, stride, dilation):
    """3x3 grouped conv (G=32) + folded BN + ReLU, K-fused & weight-stationary."""
    B, H, W, C = x.shape
    cols, Ho, Wo = grouped_im2col(x.astype(jnp.bfloat16), stride, dilation,
                                  dilation)
    P = B * Ho * Wo
    nt = C // 128
    tm = _pick_tile(P)
    out = pl.pallas_call(
        _grouped_conv_kernel,
        out_shape=jax.ShapeDtypeStruct((P, C), jnp.bfloat16),
        grid=(nt, P // tm),                          # channel tiles OUTER
        in_specs=[
            pl.BlockSpec((1, tm, 9 * 128), lambda j, i: (j, i, 0)),
            pl.BlockSpec((1, 9 * 128, 128), lambda j, i: (j, 0, 0)),
            pl.BlockSpec((1, 128), lambda j, i: (0, j)),
        ],
        out_specs=pl.BlockSpec((tm, 128), lambda j, i: (i, j)),
        compiler_params=pltpu.CompilerParams(
            dimension_semantics=("parallel", "parallel")),
    )(cols, w_tiles, bias.reshape(1, C))
    return out.reshape(B, Ho, Wo, C)


def maxpool3x3_s2(x):
    B, H, W, C = x.shape
    cols, Ho, Wo = im2col(x, 3, 2, 1, 1, pad_value=-jnp.inf, taps_major=True)
    P = B * Ho * Wo
    # Repack (9, P, C) -> (9, P*C/128, 128): elementwise max is layout-agnostic
    # and the 128-lane blocks give dense (unmasked) stores even though C=64.
    rows = (P * C) // 128
    patches = cols.reshape(9, rows, 128)
    tp = _pick_tile(rows)
    out = pl.pallas_call(
        _maxpool_kernel,
        out_shape=jax.ShapeDtypeStruct((rows, 128), x.dtype),
        grid=(rows // tp,),
        in_specs=[pl.BlockSpec((9, tp, 128), lambda i: (0, i, 0))],
        out_specs=pl.BlockSpec((tp, 128), lambda i: (i, 0)),
        compiler_params=pltpu.CompilerParams(dimension_semantics=("parallel",)),
    )(patches)
    return out.reshape(B, Ho, Wo, C)


def branch_sum_gap(f0, f1):
    """GAP of (f0 + f1) over the spatial dim, whole batch in one block stream."""
    B, S, C = f0.shape
    ts = _pick_tile(S)
    return pl.pallas_call(
        functools.partial(_gap_sum_kernel, inv_s=1.0 / S),
        out_shape=jax.ShapeDtypeStruct((B, C), jnp.float32),
        grid=(S // ts,),
        in_specs=[pl.BlockSpec((B, ts, C), lambda s: (0, s, 0)),
                  pl.BlockSpec((B, ts, C), lambda s: (0, s, 0))],
        out_specs=pl.BlockSpec((B, C), lambda s: (0, 0)),
        compiler_params=pltpu.CompilerParams(dimension_semantics=("arbitrary",)),
    )(f0, f1)


def global_avg_pool(x):
    """(B, S, C) -> (B, C); tiny final pool, single grid-less kernel."""
    B, S, C = x.shape
    return pl.pallas_call(
        functools.partial(_gap_kernel, inv_s=1.0 / S),
        out_shape=jax.ShapeDtypeStruct((B, C), jnp.float32),
    )(x)


def sk_attention(feats_S, p):
    """Fused fc+ReLU -> concatenated fcs -> 2-branch softmax (as a sigmoid)."""
    B, C = feats_S.shape
    return pl.pallas_call(
        _sk_attn_kernel,
        out_shape=jax.ShapeDtypeStruct((B, C), jnp.float32),
    )(feats_S, p['fc_w'], p['fc_b'], p['fcs_w'], p['fcs_b'])


def sk_fuse(f0, f1, a1):
    B, S, C = f0.shape
    ts = _pick_tile(S)
    return pl.pallas_call(
        _sk_fuse_kernel,
        out_shape=jax.ShapeDtypeStruct((B, S, C), jnp.bfloat16),
        grid=(B, S // ts),
        in_specs=[
            pl.BlockSpec((1, ts, C), lambda b, s: (b, s, 0)),
            pl.BlockSpec((1, ts, C), lambda b, s: (b, s, 0)),
            pl.BlockSpec((1, 1, C), lambda b, s: (b, 0, 0)),
        ],
        out_specs=pl.BlockSpec((1, ts, C), lambda b, s: (b, s, 0)),
        compiler_params=pltpu.CompilerParams(
            dimension_semantics=("parallel", "parallel")),
    )(f0, f1, a1.reshape(B, 1, C))


# ---------------------------------------------------------------------------
# Parameter initialization (deterministic; BN folded, weights in bf16)
# ---------------------------------------------------------------------------

class KeyGen:
    def __init__(self, seed):
        self._key = jax.random.PRNGKey(seed)

    def __call__(self):
        self._key, sub = jax.random.split(self._key)
        return sub


def bn_fold(C, eps=1e-5):
    gamma = jnp.ones((C,), jnp.float32)
    beta = jnp.zeros((C,), jnp.float32)
    mean = jnp.zeros((C,), jnp.float32)
    var = jnp.ones((C,), jnp.float32)
    scale = gamma / jnp.sqrt(var + eps)
    return scale, beta - mean * scale


def init_conv_bn(kg, k, cin, cout):
    """Dense kxk conv (bias-free) + folded BN -> bf16 (k*k*cin, cout), f32 bias."""
    fan_in = k * k * cin
    w = jax.random.normal(kg(), (k * k * cin, cout), jnp.float32) * math.sqrt(2.0 / fan_in)
    scale, bias = bn_fold(cout)
    return (w * scale[None, :]).astype(jnp.bfloat16), bias


def init_grouped_conv_bn(kg, C, G=32, k2=9):
    """Grouped 3x3 conv + folded BN -> (C//128, 9*128, 128) bf16 block-diag tiles.

    K order per tile is (tap, input-channel), matching grouped_im2col.
    """
    Cg = C // G
    w = jax.random.normal(kg(), (G, k2, Cg, Cg), jnp.float32) * math.sqrt(2.0 / (k2 * Cg))
    scale, bias = bn_fold(C)
    w = w * scale.reshape(G, 1, 1, Cg)            # fold BN scale per out-channel
    nt, gpt = C // 128, 128 // Cg
    wt = w.reshape(nt, gpt, k2, Cg, Cg)
    eye = jnp.eye(gpt, dtype=jnp.float32)
    # block-diagonal over the groups inside each 128-channel tile
    slab = jnp.einsum('ngkab,gh->nkgahb', wt, eye)   # (nt, k2, gpt, Cg, gpt, Cg)
    return slab.reshape(nt, k2 * 128, 128).astype(jnp.bfloat16), bias


def init_skconv(kg, features, M=2, G=32, r=16, L=32):
    d = max(int(features / r), L)
    dp = _round_up(d, 128)
    p = {'features': features, 'd': d}
    conv = [init_grouped_conv_bn(kg, features, G) for _ in range(M)]
    p['conv_w'] = [c[0] for c in conv]
    p['conv_b'] = [c[1] for c in conv]
    # fc (1x1 conv + BN folded), zero-padded to 128 hidden lanes.
    fc_w, fc_b = init_conv_bn(kg, 1, features, d)
    p['fc_w'] = jnp.pad(fc_w, ((0, 0), (0, dp - d)))
    p['fc_b'] = jnp.pad(fc_b, (0, dp - d)).reshape(1, dp)
    # M fcs 1x1 convs concatenated along N (one matmul in the fused kernel);
    # the zero-padded hidden rows contribute nothing.
    fcs_w = [jax.random.normal(kg(), (d, features), jnp.float32) * math.sqrt(2.0 / d)
             for _ in range(M)]
    fcs_b = [jax.random.normal(kg(), (features,), jnp.float32) * 0.01
             for _ in range(M)]
    w_cat = jnp.concatenate(fcs_w, axis=1)                         # (d, M*C)
    p['fcs_w'] = jnp.pad(w_cat, ((0, dp - d), (0, 0))).astype(jnp.bfloat16)
    p['fcs_b'] = jnp.concatenate(fcs_b).reshape(1, M * features)
    return p


def init_skunit(kg, in_f, mid_f, out_f, stride):
    p = {'mid': mid_f, 'out': out_f, 'stride': stride}
    p['conv1_w'], p['conv1_b'] = init_conv_bn(kg, 1, in_f, mid_f)
    p['sk'] = init_skconv(kg, mid_f)
    p['conv3_w'], p['conv3_b'] = init_conv_bn(kg, 1, mid_f, out_f)
    if in_f != out_f:
        p['shortcut_w'], p['shortcut_b'] = init_conv_bn(kg, 1, in_f, out_f)
    else:
        p['shortcut_w'] = None
        p['shortcut_b'] = None
    return p


def init_sknet(seed, class_num, nums_block_list, strides_list):
    kg = KeyGen(seed)
    params = {}
    params['basic_w'], params['basic_b'] = init_conv_bn(kg, 7, 3, 64)
    stage_defs = [(64, 128, 128), (128, 256, 512), (512, 512, 1024), (1024, 1024, 2048)]
    stages = []
    for (in_f, mid_f, out_f), n_blocks, stride in zip(stage_defs, nums_block_list,
                                                      strides_list):
        units = [init_skunit(kg, in_f, mid_f, out_f, stride)]
        for _ in range(1, n_blocks):
            units.append(init_skunit(kg, out_f, mid_f, out_f, 1))
        stages.append(units)
    params['stages'] = stages
    params['cls_w'] = (jax.random.normal(kg(), (2048, class_num), jnp.float32)
                       * math.sqrt(1.0 / 2048)).astype(jnp.bfloat16)
    params['cls_b'] = jax.random.normal(kg(), (class_num,), jnp.float32) * 0.01
    return params


# ---------------------------------------------------------------------------
# Forward pass
# ---------------------------------------------------------------------------

def skconv_forward(x, p, stride):
    B, H, W, C = x.shape
    f0 = grouped_conv_bn_relu(x, p['conv_w'][0], p['conv_b'][0], stride, 1)
    f1 = grouped_conv_bn_relu(x, p['conv_w'][1], p['conv_b'][1], stride, 2)
    _, Ho, Wo, _ = f0.shape
    S = Ho * Wo
    f0 = f0.reshape(B, S, C)
    f1 = f1.reshape(B, S, C)
    feats_S = branch_sum_gap(f0, f1)        # (B, C) f32  : GAP(f0 + f1)
    a1 = sk_attention(feats_S, p)           # (B, C) f32  : branch-1 softmax weight
    v = sk_fuse(f0, f1, a1)                 # (B, S, C) bf16
    return v.reshape(B, Ho, Wo, C)


def skunit_forward(x, p):
    B, H, W, Cin = x.shape
    stride, mid, out_f = p['stride'], p['mid'], p['out']
    h = fused_matmul(x.reshape(B * H * W, Cin), p['conv1_w'], p['conv1_b'],
                     relu=True, out_dtype=jnp.bfloat16)
    h = skconv_forward(h.reshape(B, H, W, mid), p['sk'], stride)
    _, Ho, Wo, _ = h.shape
    P = B * Ho * Wo
    xs = x[:, ::stride, ::stride, :].reshape(P, Cin)
    hf = h.reshape(P, mid)
    if p['shortcut_w'] is None:
        # identity shortcut: conv3 + BN + residual add + ReLU in one epilogue
        y = fused_matmul(hf, p['conv3_w'], p['conv3_b'], relu=True,
                         residual=xs.astype(jnp.bfloat16), out_dtype=jnp.bfloat16)
    else:
        # projection shortcut fused into conv3 (two matmuls, one accumulator)
        y = fused_dual_matmul(hf, p['conv3_w'], xs, p['shortcut_w'],
                              p['conv3_b'] + p['shortcut_b'],
                              out_dtype=jnp.bfloat16)
    return y.reshape(B, Ho, Wo, out_f)


def sknet_forward(x, params):
    # x: (B, H, W, 3) f32 NHWC
    B = x.shape[0]
    cols, Ho, Wo = im2col(x.astype(jnp.bfloat16), 7, 2, 3, 1, taps_major=False)
    fea = fused_matmul(cols.reshape(B * Ho * Wo, cols.shape[-2] * cols.shape[-1]),
                       params['basic_w'], params['basic_b'], relu=True,
                       out_dtype=jnp.bfloat16)                     # K 147 -> 256
    fea = fea.reshape(B, Ho, Wo, 64)
    fea = maxpool3x3_s2(fea)                                        # bf16
    for stage in params['stages']:
        for unit in stage:
            fea = skunit_forward(fea, unit)
    _, H, W, C = fea.shape
    pooled = global_avg_pool(fea.reshape(B, H * W, C))              # (B, 2048) f32
    logits = fused_matmul(pooled, params['cls_w'], params['cls_b'])
    return logits


# ---------------------------------------------------------------------------

if __name__ == "__main__":
    class_num = 10
    # Small config consistent with the module: SKNet(class_num, nums_block_list=[1,1,1,1])
    params = init_sknet(seed=0, class_num=class_num,
                        nums_block_list=[1, 1, 1, 1], strides_list=[1, 2, 2, 2])

    key = jax.random.PRNGKey(0)
    x_nchw = jax.random.normal(key, (2, 3, 32, 32), jnp.float32)   # PyTorch-style NCHW
    x_nhwc = jnp.transpose(x_nchw, (0, 2, 3, 1))                   # kernel layout: NHWC

    logits = sknet_forward(x_nhwc, params)
    logits = jax.block_until_ready(logits)
    assert logits.shape == (2, class_num), logits.shape
    assert bool(jnp.all(jnp.isfinite(logits)))
    print("KERNEL_OK")
</pallas_src>

<mosaic_0001>
module attributes {stable_mosaic.version = 11 : i64} {
  func.func @_matmul_kernel(%arg0: i32, %arg1: i32, %arg2: memref<512x256xbf16, #tpu.memory_space<vmem>>, %arg3: memref<256x128xbf16, #tpu.memory_space<vmem>>, %arg4: memref<1x128xf32, #tpu.memory_space<vmem>>, %arg5: memref<512x128xbf16, #tpu.memory_space<vmem>>) attributes {dimension_semantics = [#tpu.dimension_semantics<parallel>, #tpu.dimension_semantics<parallel>], iteration_bounds = array<i64: 1, 1>, scalar_prefetch = 0 : i64, scratch_operands = 0 : i64, tpu.core_type = #tpu.core_type<tc>, window_params = [{transform_indices = @transform_0, window_bounds = array<i64: 512, 256>}, {transform_indices = @transform_1, window_bounds = array<i64: 256, 128>}, {transform_indices = @transform_2, window_bounds = array<i64: 1, 128>}, {transform_indices = @transform_3, window_bounds = array<i64: 512, 128>}]} {
    %c0 = arith.constant 0 : index
    %c0_0 = arith.constant 0 : index
    %0 = vector.load %arg2[%c0, %c0_0] : memref<512x256xbf16, #tpu.memory_space<vmem>>, vector<512x256xbf16>
    %c0_1 = arith.constant 0 : index
    %c0_2 = arith.constant 0 : index
    %1 = vector.load %arg3[%c0_1, %c0_2] : memref<256x128xbf16, #tpu.memory_space<vmem>>, vector<256x128xbf16>
    %cst = arith.constant dense<0.000000e+00> : vector<512x128xf32>
    %2 = tpu.matmul %0, %1, %cst {dimension_numbers = #tpu.dot_dimension_numbers<[1], [0], [0], [1], [0, 0, 1, 1], [], []>} : vector<512x256xbf16>, vector<256x128xbf16>, vector<512x128xf32> -> vector<512x128xf32>
    %c0_3 = arith.constant 0 : index
    %c0_4 = arith.constant 0 : index
    %3 = vector.load %arg4[%c0_3, %c0_4] : memref<1x128xf32, #tpu.memory_space<vmem>>, vector<1x128xf32>
    %4 = vector.broadcast %3 : vector<1x128xf32> to vector<512x128xf32>
    %5 = arith.addf %2, %4 : vector<512x128xf32>
    %cst_5 = arith.constant 0.000000e+00 : f32
    %6 = vector.broadcast %cst_5 : f32 to vector<512x128xf32>
    %7 = arith.maximumf %5, %6 : vector<512x128xf32>
    %8 = arith.truncf %7 : vector<512x128xf32> to vector<512x128xbf16>
    %c0_6 = arith.constant 0 : index
    %c0_7 = arith.constant 0 : index
    %9 = vector.load %arg5[%c0_6, %c0_7] : memref<512x128xbf16, #tpu.memory_space<vmem>>, vector<512x128xbf16>
    tpu.vector_store %arg5[%c0_6, %c0_7], %8 {strides = array<i32>} : memref<512x128xbf16, #tpu.memory_space<vmem>>, vector<512x128xbf16>,
    return
  }
  func.func @transform_0(%arg0: i32, %arg1: i32) -> (i32, i32) {
    %c0_i32 = arith.constant 0 : i32
    %c0_i32_0 = arith.constant 0 : i32
    return %arg1, %c0_i32 : i32, i32
  }
  func.func @transform_1(%arg0: i32, %arg1: i32) -> (i32, i32) {
    %c0_i32 = arith.constant 0 : i32
    %c0_i32_0 = arith.constant 0 : i32
    return %c0_i32, %arg0 : i32, i32
  }
  func.func @transform_2(%arg0: i32, %arg1: i32) -> (i32, i32) {
    %c0_i32 = arith.constant 0 : i32
    %c0_i32_0 = arith.constant 0 : i32
    return %c0_i32, %arg0 : i32, i32
  }
  func.func @transform_3(%arg0: i32, %arg1: i32) -> (i32, i32) {
    %c0_i32 = arith.constant 0 : i32
    return %arg1, %arg0 : i32, i32
  }
}

</mosaic_0001>

<bundles_post_ra>
// kernel: tpu_custom_call.1
= control target key start
LH: loop header
LB: loop body
LE: loop exit
PB: predicated region body
PF: predicated region fallthrough
CT: control target
= control target key end

     0   :  { %8 = vsyncpa [#allocation3], 0  ;;  %s2049_s0 = inlined_call_operand.hbm [shape: bf16[512,256], index: 0, kind: input, shape index: {}]   ;;  %s2050_s1 = inlined_call_operand.hbm [shape: bf16[256,128], index: 1, kind: input, shape index: {}]   ;;  %s2051_s2 = inlined_call_operand.vmem [shape: f32[1,128], index: 2, kind: input, shape index: {}]   ;;  %s2052_s3 = inlined_call_operand.hbm [shape: bf16[512,128], index: 3, kind: output, shape index: {}]  }
   0x1   :  { %9 = vsyncpa [#allocation6], 0 }
   0x2   :  { %10 = vsyncpa [#allocation4], 0  ;;  %s1878_s12 = smov [#allocation2]   ;;  %s1806_s16 = scalar_lea.hbm %s2049_s0, 8192 }
   0x3   :  { %s16_s13 = sshll.u32 %s1878_s12, 4  ;;  %p1807_p0 = scmp.ne.s32.totalorder %s2049_s0, %s1806_s16  ;;  %s17_s13 = int_to_ptr.vmem [resolvable:$true] %s16_s13 }
   0x4   :  { %p1810_p1 = scmp.lt.u32.totalorder %s1806_s16, %s2049_s0 }
   0x6   :  { %p1812_p2 = pnand %p1810_p1, %p1807_p0 }
   0x8   :  { %1815 = shalt.err (!%p1812_p2)
}
   0x9   :  { %s1816_s21 = scalar_lea.vmem %s17_s13, 8192  ;;  %p1821_p4 = scmp.lt.s32.totalorder %s17_s13, %s17_s13 }
   0xa   :  { %p1817_p3 = scmp.ne.s32.totalorder %s17_s13, %s1816_s21  ;;  %p1822_p5 = scmp.lt.s32.totalorder %s1816_s21, %s1816_s21 }
   0xc   :  { %p1823_p6 = por %p1822_p5, %p1821_p4 }
   0xe   :  { %p1824_p7 = pnand %p1823_p6, %p1817_p3 }
  0x10   :  { %1827 = shalt.err (!%p1824_p7)
}
  0x11   :  { %s1879_s22 = smov 128   ;;  %s1880_s23 = smov 8  }
  0x12   :  { %22 = dma.hbm_to_vmem [thread:$0]  %s2049_s0, 8192, %s17_s13, [#allocation3], %s1879_s22, %s1879_s22, %s1880_s23  }
  0x13   :  { %s1881_s26 = smov [#allocation5]   ;;  %s1828_s30 = scalar_lea.hbm %s2050_s1, 2048 }
  0x14   :  { %s28_s27 = sshll.u32 %s1881_s26, 4  ;;  %p1829_p8 = scmp.ne.s32.totalorder %s2050_s1, %s1828_s30  ;;  %s29_s27 = int_to_ptr.vmem [resolvable:$true] %s28_s27 }
  0x15   :  { %p1832_p9 = scmp.lt.u32.totalorder %s1828_s30, %s2050_s1 }
  0x17   :  { %p1834_p10 = pnand %p1832_p9, %p1829_p8 }
  0x19   :  { %1837 = shalt.err (!%p1834_p10)
}
  0x1a   :  { %s1838_s8 = scalar_lea.vmem %s29_s27, 2048  ;;  %p1843_p12 = scmp.lt.s32.totalorder %s29_s27, %s29_s27 }
  0x1b   :  { %p1839_p11 = scmp.ne.s32.totalorder %s29_s27, %s1838_s8  ;;  %p1844_p13 = scmp.lt.s32.totalorder %s1838_s8, %s1838_s8 }
  0x1d   :  { %p1845_p0 = por %p1844_p13, %p1843_p12 }
  0x1f   :  { %p1846_p1 = pnand %p1845_p0, %p1839_p11 }
  0x21   :  { %1849 = shalt.err (!%p1846_p1)
}
  0x22   :  { %s1882_s0 = smov 64   ;;  %s1883_s9 = smov 4  }
  0x23   :  { %34 = dma.hbm_to_vmem [thread:$0]  %s2050_s1, 2048, %s29_s27, [#allocation6], %s1882_s0, %s1882_s0, %s1883_s9  }
  0x24   :  { %1872 = dma.done.wait [#allocation3], 8192  }
  0x25   :  { %1873 = vsyncadd [#allocation3], 4294959104 }
  0x26   :  { %1874 = dma.done.wait [#allocation6], 2048  }
  0x27   :  { %1875 = vsyncadd [#allocation6], 4294965248  ;;  %v1884_v0 = vmov 0   ;;  %v1694_v1 = vld [vmem:[#allocation5] sm:$0xff]   ;;  %v1695_v2 = vld [vmem:[#allocation5 + $0x8] sm:$0xff]  }
  0x28   :  { %563 = vmatprep.subr.bf16.mxu0 %v1884_v0  ;;  %1654 = vmatprep.subr.bf16.mxu1 %v1884_v0  ;;  %v1696_v3 = vld [vmem:[#allocation5 + $0x10] sm:$0xff]   ;;  %v1697_v4 = vld [vmem:[#allocation5 + $0x18] sm:$0xff]   ;;  %v1698_v5 = vld [vmem:[#allocation5 + $0x20] sm:$0xff]  }
  0x29   :  { %564 = vmatpush1.bf16.msra.mxu0 %v1694_v1  ;;  %1670 = vmatpush1.bf16.msra.mxu1 %v1694_v1  ;;  %v1712_v6 = vld [vmem:[#allocation2 + $0x4] ss:$8 sps:$4 sm:$0xff]   ;;  %v1700_v9 = vld [vmem:[#allocation5 + $0x30] sm:$0xff]   ;;  %v1701_v10 = vld [vmem:[#allocation5 + $0x38] sm:$0xff]  }
  0x2a   :  { %565 = vmatprep.subr.bf16.mxu0 %v1884_v0  ;;  %1655 = vmatprep.subr.bf16.mxu1 %v1884_v0  ;;  %v1699_v7 = vld [vmem:[#allocation5 + $0x28] sm:$0xff]   ;;  %v1702_v11 = vld [vmem:[#allocation5 + $0x40] sm:$0xff]   ;;  %v1704_v13 = vld [vmem:[#allocation5 + $0x50] sm:$0xff]  }
  0x2b   :  { %v1715_v8 = vld [vmem:[#allocation2 + $0x104] ss:$8 sps:$4 sm:$0xff]   ;;  %595 = vmatprep.mubr.bf16.mxu0 %v1712_v6  ;;  %v1705_v14 = vld [vmem:[#allocation5 + $0x58] sm:$0xff]   ;;  %v1708_v17 = vld [vmem:[#allocation5 + $0x70] sm:$0xff]  }
  0x2c   :  { %723 = vmatprep.mubr.bf16.mxu1 %v1715_v8  ;;  %v1703_v12 = vld [vmem:[#allocation5 + $0x48] sm:$0xff]   ;;  %v1706_v15 = vld [vmem:[#allocation5 + $0x60] sm:$0xff]   ;;  %v1709_v18 = vld [vmem:[#allocation5 + $0x78] sm:$0xff]  }
  0x2d   :  { %566 = vmatpush1.bf16.msra.mxu0 %v1695_v2  ;;  %1671 = vmatpush1.bf16.msra.mxu1 %v1695_v2  ;;  %v1707_v16 = vld [vmem:[#allocation5 + $0x68] sm:$0xff]   ;;  %v1716_v21 = vld [vmem:[#allocation2 + $0x14] ss:$8 sps:$4 sm:$0xff]   ;;  %v1720_v23 = vld [vmem:[#allocation2 + $0x10] ss:$8 sps:$4 sm:$0xff]  }
  0x2e   :  { %567 = vmatprep.subr.bf16.mxu0 %v1884_v0  ;;  %1656 = vmatprep.subr.bf16.mxu1 %v1884_v0  ;;  %v1710_v19 = vld [vmem:[#allocation2] ss:$8 sps:$4 sm:$0xff]   ;;  %v1718_v22 = vld [vmem:[#allocation2 + $0x114] ss:$8 sps:$4 sm:$0xff]   ;;  %v1721_v24 = vld [vmem:[#allocation2 + $0x110] ss:$8 sps:$4 sm:$0xff]  }
  0x2f   :  { %v1713_v20 = vld [vmem:[#allocation2 + $0x100] ss:$8 sps:$4 sm:$0xff]   ;;  %v1722_v25 = vld [vmem:[#allocation2 + $0x24] ss:$8 sps:$4 sm:$0xff]   ;;  %v1728_v29 = vld [vmem:[#allocation2 + $0x34] ss:$8 sps:$4 sm:$0xff]  }
  0x30   :  { %v1724_v26 = vld [vmem:[#allocation2 + $0x124] ss:$8 sps:$4 sm:$0xff]   ;;  %v1726_v27 = vld [vmem:[#allocation2 + $0x20] ss:$8 sps:$4 sm:$0xff]   ;;  %v1730_v30 = vld [vmem:[#allocation2 + $0x134] ss:$8 sps:$4 sm:$0xff]  }
  0x31   :  { %568 = vmatpush1.bf16.msra.mxu0 %v1696_v3  ;;  %1672 = vmatpush1.bf16.msra.mxu1 %v1696_v3  ;;  %v1727_v28 = vld [vmem:[#allocation2 + $0x120] ss:$8 sps:$4 sm:$0xff]   ;;  %v1732_v31 = vld [vmem:[#allocation2 + $0x30] ss:$8 sps:$4 sm:$0xff]   ;;  %v1734_v33 = vld [vmem:[#allocation2 + $0x44] ss:$8 sps:$4 sm:$0xff]  }
  0x32   :  { %569 = vmatprep.subr.bf16.mxu0 %v1884_v0  ;;  %1657 = vmatprep.subr.bf16.mxu1 %v1884_v0  ;;  %v1733_v32 = vld [vmem:[#allocation2 + $0x130] ss:$8 sps:$4 sm:$0xff]   ;;  %v1736_v34 = vld [vmem:[#allocation2 + $0x144] ss:$8 sps:$4 sm:$0xff]   ;;  %v1738_v35 = vld [vmem:[#allocation2 + $0x40] ss:$8 sps:$4 sm:$0xff]  }
  0x33   :  { %v1739_v36 = vld [vmem:[#allocation2 + $0x140] ss:$8 sps:$4 sm:$0xff]   ;;  %v1740_v37 = vld [vmem:[#allocation2 + $0x54] ss:$8 sps:$4 sm:$0xff]   ;;  %v1744_v39 = vld [vmem:[#allocation2 + $0x50] ss:$8 sps:$4 sm:$0xff]  }
  0x34   :  { %v1742_v38 = vld [vmem:[#allocation2 + $0x154] ss:$8 sps:$4 sm:$0xff]   ;;  %v1745_v40 = vld [vmem:[#allocation2 + $0x150] ss:$8 sps:$4 sm:$0xff]   ;;  %v1746_v41 = vld [vmem:[#allocation2 + $0x64] ss:$8 sps:$4 sm:$0xff]  }
  0x35   :  { %570 = vmatpush1.bf16.msra.mxu0 %v1697_v4  ;;  %1673 = vmatpush1.bf16.msra.mxu1 %v1697_v4  ;;  %v1748_v42 = vld [vmem:[#allocation2 + $0x164] ss:$8 sps:$4 sm:$0xff]   ;;  %v1750_v43 = vld [vmem:[#allocation2 + $0x60] ss:$8 sps:$4 sm:$0xff]   ;;  %v1752_v45 = vld [vmem:[#allocation2 + $0x74] ss:$8 sps:$4 sm:$0xff]  }
  0x36   :  { %571 = vmatprep.subr.bf16.mxu0 %v1884_v0  ;;  %1658 = vmatprep.subr.bf16.mxu1 %v1884_v0  ;;  %v1751_v44 = vld [vmem:[#allocation2 + $0x160] ss:$8 sps:$4 sm:$0xff]   ;;  %v1754_v46 = vld [vmem:[#allocation2 + $0x174] ss:$8 sps:$4 sm:$0xff]   ;;  %v1756_v47 = vld [vmem:[#allocation2 + $0x70] ss:$8 sps:$4 sm:$0xff]  }
  0x37   :  { %v1757_v48 = vld [vmem:[#allocation2 + $0x170] ss:$8 sps:$4 sm:$0xff]   ;;  %v1758_v49 = vld [vmem:[#allocation2 + $0x84] ss:$8 sps:$4 sm:$0xff]   ;;  %v1762_v51 = vld [vmem:[#allocation2 + $0x80] ss:$8 sps:$4 sm:$0xff]  }
  0x38   :  { %v1760_v50 = vld [vmem:[#allocation2 + $0x184] ss:$8 sps:$4 sm:$0xff]   ;;  %v1763_v52 = vld [vmem:[#allocation2 + $0x180] ss:$8 sps:$4 sm:$0xff]   ;;  %v1764_v53 = vld [vmem:[#allocation2 + $0x94] ss:$8 sps:$4 sm:$0xff]  }
  0x39   :  { %572 = vmatpush1.bf16.msra.mxu0 %v1698_v5  ;;  %1674 = vmatpush1.bf16.msra.mxu1 %v1698_v5  ;;  %v1766_v54 = vld [vmem:[#allocation2 + $0x194] ss:$8 sps:$4 sm:$0xff]   ;;  %v1768_v55 = vld [vmem:[#allocation2 + $0x90] ss:$8 sps:$4 sm:$0xff]   ;;  %v1770_v57 = vld [vmem:[#allocation2 + $0xa4] ss:$8 sps:$4 sm:$0xff]  }
  0x3a   :  { %573 = vmatprep.subr.bf16.mxu0 %v1884_v0  ;;  %1659 = vmatprep.subr.bf16.mxu1 %v1884_v0  ;;  %v1769_v56 = vld [vmem:[#allocation2 + $0x190] ss:$8 sps:$4 sm:$0xff]   ;;  %v1772_v58 = vld [vmem:[#allocation2 + $0x1a4] ss:$8 sps:$4 sm:$0xff]   ;;  %v1774_v59 = vld [vmem:[#allocation2 + $0xa0] ss:$8 sps:$4 sm:$0xff]  }
  0x3b   :  { %v1775_v60 = vld [vmem:[#allocation2 + $0x1a0] ss:$8 sps:$4 sm:$0xff]   ;;  %v1776_v61 = vld [vmem:[#allocation2 + $0xb4] ss:$8 sps:$4 sm:$0xff]   ;;  %v1780_v63 = vld [vmem:[#allocation2 + $0xb0] ss:$8 sps:$4 sm:$0xff]  }
  0x3c   :  { %v1778_v62 = vld [vmem:[#allocation2 + $0x1b4] ss:$8 sps:$4 sm:$0xff]   ;;  %v1782_v1 = vld [vmem:[#allocation2 + $0xc4] ss:$8 sps:$4 sm:$0xff]   ;;  %v1786_v3 = vld [vmem:[#allocation2 + $0xc0] ss:$8 sps:$4 sm:$0xff]  }
  0x3d   :  { %574 = vmatpush1.bf16.msra.mxu0 %v1699_v7  ;;  %1675 = vmatpush1.bf16.msra.mxu1 %v1699_v7  ;;  %v1784_v2 = vld [vmem:[#allocation2 + $0x1c4] ss:$8 sps:$4 sm:$0xff]   ;;  %v1787_v4 = vld [vmem:[#allocation2 + $0x1c0] ss:$8 sps:$4 sm:$0xff]   ;;  %v1788_v5 = vld [vmem:[#allocation2 + $0xd4] ss:$8 sps:$4 sm:$0xff]  }
  0x3e   :  { %575 = vmatprep.subr.bf16.mxu0 %v1884_v0  ;;  %1660 = vmatprep.subr.bf16.mxu1 %v1884_v0  ;;  %v1790_v6 = vld [vmem:[#allocation2 + $0x1d4] ss:$8 sps:$4 sm:$0xff]   ;;  %v1792_v7 = vld [vmem:[#allocation2 + $0xd0] ss:$8 sps:$4 sm:$0xff]  }
  0x3f   :  { %v1793_v8 = vld [vmem:[#allocation2 + $0x1d0] ss:$8 sps:$4 sm:$0xff]  }
  0x41   :  { %576 = vmatpush1.bf16.msra.mxu0 %v1700_v9  ;;  %1676 = vmatpush1.bf16.msra.mxu1 %v1700_v9  ;;  %v1794_v9 = vld [vmem:[#allocation2 + $0xe4] ss:$8 sps:$4 sm:$0xff]  }
  0x42   :  { %577 = vmatprep.subr.bf16.mxu0 %v1884_v0  ;;  %1661 = vmatprep.subr.bf16.mxu1 %v1884_v0 }
  0x45   :  { %578 = vmatpush1.bf16.msra.mxu0 %v1701_v10  ;;  %1677 = vmatpush1.bf16.msra.mxu1 %v1701_v10  ;;  %v1796_v10 = vld [vmem:[#allocation2 + $0x1e4] ss:$8 sps:$4 sm:$0xff]  }
  0x46   :  { %579 = vmatprep.subr.bf16.mxu0 %v1884_v0  ;;  %1662 = vmatprep.subr.bf16.mxu1 %v1884_v0 }
  0x49   :  { %580 = vmatpush1.bf16.msra.mxu0 %v1702_v11  ;;  %1678 = vmatpush1.bf16.msra.mxu1 %v1702_v11  ;;  %v1798_v11 = vld [vmem:[#allocation2 + $0xe0] ss:$8 sps:$4 sm:$0xff]  }
  0x4a   :  { %581 = vmatprep.subr.bf16.mxu0 %v1884_v0  ;;  %1663 = vmatprep.subr.bf16.mxu1 %v1884_v0 }
  0x4d   :  { %582 = vmatpush1.bf16.msra.mxu0 %v1703_v12  ;;  %1679 = vmatpush1.bf16.msra.mxu1 %v1703_v12  ;;  %v1799_v12 = vld [vmem:[#allocation2 + $0x1e0] ss:$8 sps:$4 sm:$0xff]  }
  0x4e   :  { %583 = vmatprep.subr.bf16.mxu0 %v1884_v0  ;;  %1664 = vmatprep.subr.bf16.mxu1 %v1884_v0 }
  0x51   :  { %584 = vmatpush1.bf16.msra.mxu0 %v1704_v13  ;;  %1680 = vmatpush1.bf16.msra.mxu1 %v1704_v13  ;;  %v1800_v13 = vld [vmem:[#allocation2 + $0xf4] ss:$8 sps:$4 sm:$0xff]  }
  0x52   :  { %585 = vmatprep.subr.bf16.mxu0 %v1884_v0  ;;  %1665 = vmatprep.subr.bf16.mxu1 %v1884_v0 }
  0x55   :  { %586 = vmatpush1.bf16.msra.mxu0 %v1705_v14  ;;  %1681 = vmatpush1.bf16.msra.mxu1 %v1705_v14  ;;  %v1802_v14 = vld [vmem:[#allocation2 + $0x1f4] ss:$8 sps:$4 sm:$0xff]  }
  0x56   :  { %587 = vmatprep.subr.bf16.mxu0 %v1884_v0  ;;  %1666 = vmatprep.subr.bf16.mxu1 %v1884_v0 }
  0x59   :  { %588 = vmatpush1.bf16.msra.mxu0 %v1706_v15  ;;  %1682 = vmatpush1.bf16.msra.mxu1 %v1706_v15  ;;  %v1804_v15 = vld [vmem:[#allocation2 + $0xf0] ss:$8 sps:$4 sm:$0xff]  }
  0x5a   :  { %589 = vmatprep.subr.bf16.mxu0 %v1884_v0  ;;  %1667 = vmatprep.subr.bf16.mxu1 %v1884_v0 }
  0x5d   :  { %590 = vmatpush1.bf16.msra.mxu0 %v1707_v16  ;;  %1683 = vmatpush1.bf16.msra.mxu1 %v1707_v16  ;;  %v1805_v16 = vld [vmem:[#allocation2 + $0x1f0] ss:$8 sps:$4 sm:$0xff]  }
  0x5e   :  { %591 = vmatprep.subr.bf16.mxu0 %v1884_v0  ;;  %1668 = vmatprep.subr.bf16.mxu1 %v1884_v0 }
  0x61   :  { %592 = vmatpush1.bf16.msra.mxu0 %v1708_v17  ;;  %1684 = vmatpush1.bf16.msra.mxu1 %v1708_v17  ;;  %v1968_v17 = vld [vmem:[%s2051_s2] ss:$0 sm:$0xff]  ;;  %s1885_s2 = smov [#allocation7]  }
  0x62   :  { %593 = vmatprep.subr.bf16.mxu0 %v1884_v0  ;;  %1669 = vmatprep.subr.bf16.mxu1 %v1884_v0  ;;  %v1781_v0 = vld [vmem:[#allocation2 + $0x1b0] ss:$8 sps:$4 sm:$0xff]   ;;  %s1241_s13 = sshll.u32 %s1885_s2, 4  ;;  %s1242_s13 = int_to_ptr.vmem [resolvable:$true] %s1241_s13 }
  0x63   :  { %s1850_s14 = scalar_lea.vmem %s1242_s13, 4096  ;;  %p1855_p3 = scmp.lt.s32.totalorder %s1242_s13, %s1242_s13 }
  0x64   :  { %p1851_p2 = scmp.ne.s32.totalorder %s1242_s13, %s1850_s14  ;;  %p1856_p4 = scmp.lt.s32.totalorder %s1850_s14, %s1850_s14 }
  0x65   :  { %594 = vmatpush1.bf16.msra.mxu0 %v1709_v18  ;;  %1685 = vmatpush1.bf16.msra.mxu1 %v1709_v18 }
  0x66   :  { %p1857_p5 = por %p1856_p4, %p1855_p3 }
  0x68   :  { %596 = vmatmul.mubr.bf16.vlgmr.msra.gmra.mrb[0].mxu0 %v1710_v19  ;;  %724 = vmatmul.mubr.bf16.vlgmr.msra.gmra.mrb[0].mxu1 %v1713_v20  ;;  %p1858_p6 = pnand %p1857_p5, %p1851_p2 }
  0x69   :  { %603 = vmatprep.mubr.bf16.mxu0 %v1716_v21  ;;  %731 = vmatprep.mubr.bf16.mxu1 %v1718_v22 }
  0x70   :  { %604 = vmatmul.mubr.bf16.gmra.mrb[4].mxu0 %v1720_v23  ;;  %732 = vmatmul.mubr.bf16.gmra.mrb[4].mxu1 %v1721_v24 }
  0x71   :  { %611 = vmatprep.mubr.bf16.mxu0 %v1722_v25  ;;  %739 = vmatprep.mubr.bf16.mxu1 %v1724_v26 }
  0x78   :  { %612 = vmatmul.mubr.bf16.gmra.mrb[8].mxu0 %v1726_v27  ;;  %740 = vmatmul.mubr.bf16.gmra.mrb[8].mxu1 %v1727_v28 }
  0x79   :  { %619 = vmatprep.mubr.bf16.mxu0 %v1728_v29  ;;  %747 = vmatprep.mubr.bf16.mxu1 %v1730_v30 }
  0x80   :  { %620 = vmatmul.mubr.bf16.gmra.mrb[12].mxu0 %v1732_v31  ;;  %748 = vmatmul.mubr.bf16.gmra.mrb[12].mxu1 %v1733_v32 }
  0x81   :  { %627 = vmatprep.mubr.bf16.mxu0 %v1734_v33  ;;  %755 = vmatprep.mubr.bf16.mxu1 %v1736_v34 }
  0x88   :  { %628 = vmatmul.mubr.bf16.gmra.mrb[16].mxu0 %v1738_v35  ;;  %756 = vmatmul.mubr.bf16.gmra.mrb[16].mxu1 %v1739_v36 }
  0x89   :  { %635 = vmatprep.mubr.bf16.mxu0 %v1740_v37  ;;  %763 = vmatprep.mubr.bf16.mxu1 %v1742_v38 }
  0x90   :  { %636 = vmatmul.mubr.bf16.gmra.mrb[20].mxu0 %v1744_v39  ;;  %764 = vmatmul.mubr.bf16.gmra.mrb[20].mxu1 %v1745_v40 }
  0x91   :  { %643 = vmatprep.mubr.bf16.mxu0 %v1746_v41  ;;  %771 = vmatprep.mubr.bf16.mxu1 %v1748_v42 }
  0x98   :  { %644 = vmatmul.mubr.bf16.gmra.mrb[24].mxu0 %v1750_v43  ;;  %772 = vmatmul.mubr.bf16.gmra.mrb[24].mxu1 %v1751_v44 }
  0x99   :  { %651 = vmatprep.mubr.bf16.mxu0 %v1752_v45  ;;  %779 = vmatprep.mubr.bf16.mxu1 %v1754_v46 }
  0xa0   :  { %652 = vmatmul.mubr.bf16.gmra.mrb[28].mxu0 %v1756_v47  ;;  %780 = vmatmul.mubr.bf16.gmra.mrb[28].mxu1 %v1757_v48 }
  0xa1   :  { %659 = vmatprep.mubr.bf16.mxu0 %v1758_v49  ;;  %787 = vmatprep.mubr.bf16.mxu1 %v1760_v50 }
  0xa8   :  { %660 = vmatmul.mubr.bf16.gmra.mrb[32].mxu0 %v1762_v51  ;;  %788 = vmatmul.mubr.bf16.gmra.mrb[32].mxu1 %v1763_v52 }
  0xa9   :  { %667 = vmatprep.mubr.bf16.mxu0 %v1764_v53  ;;  %795 = vmatprep.mubr.bf16.mxu1 %v1766_v54 }
  0xb0   :  { %668 = vmatmul.mubr.bf16.gmra.mrb[36].mxu0 %v1768_v55  ;;  %796 = vmatmul.mubr.bf16.gmra.mrb[36].mxu1 %v1769_v56 }
  0xb1   :  { %675 = vmatprep.mubr.bf16.mxu0 %v1770_v57  ;;  %803 = vmatprep.mubr.bf16.mxu1 %v1772_v58 }
  0xb8   :  { %676 = vmatmul.mubr.bf16.gmra.mrb[40].mxu0 %v1774_v59  ;;  %804 = vmatmul.mubr.bf16.gmra.mrb[40].mxu1 %v1775_v60 }
  0xb9   :  { %683 = vmatprep.mubr.bf16.mxu0 %v1776_v61  ;;  %811 = vmatprep.mubr.bf16.mxu1 %v1778_v62 }
  0xc0   :  { %684 = vmatmul.mubr.bf16.gmra.mrb[44].mxu0 %v1780_v63  ;;  %812 = vmatmul.mubr.bf16.gmra.mrb[44].mxu1 %v1781_v0 }
  0xc1   :  { %691 = vmatprep.mubr.bf16.mxu0 %v1782_v1  ;;  %819 = vmatprep.mubr.bf16.mxu1 %v1784_v2 }
  0xc8   :  { %692 = vmatmul.mubr.bf16.gmra.mrb[48].mxu0 %v1786_v3  ;;  %820 = vmatmul.mubr.bf16.gmra.mrb[48].mxu1 %v1787_v4 }
  0xc9   :  { %699 = vmatprep.mubr.bf16.mxu0 %v1788_v5  ;;  %827 = vmatprep.mubr.bf16.mxu1 %v1790_v6 }
  0xd0   :  { %700 = vmatmul.mubr.bf16.gmra.mrb[52].mxu0 %v1792_v7  ;;  %828 = vmatmul.mubr.bf16.gmra.mrb[52].mxu1 %v1793_v8 }
  0xd1   :  { %707 = vmatprep.mubr.bf16.mxu0 %v1794_v9  ;;  %835 = vmatprep.mubr.bf16.mxu1 %v1796_v10 }
  0xd8   :  { %708 = vmatmul.mubr.bf16.gmra.mrb[56].mxu0 %v1798_v11  ;;  %836 = vmatmul.mubr.bf16.gmra.mrb[56].mxu1 %v1799_v12 }
  0xd9   :  { %715 = vmatprep.mubr.bf16.mxu0 %v1800_v13  ;;  %843 = vmatprep.mubr.bf16.mxu1 %v1802_v14 }
  0xe0   :  { %716 = vmatmul.mubr.bf16.gmra.mrb[60].mxu0 %v1804_v15  ;;  %844 = vmatmul.mubr.bf16.gmra.mrb[60].mxu1 %v1805_v16 }
 0x13b   :  { %v597_v18 = vpop.f32.mrb[0].mxu0  ;;  %v725_v19 = vpop.f32.mrb[0].mxu1 }
 0x13c   :  { %v598_v20 = vadd.f32 %v1968_v17, %v597_v18  ;;  %v726_v21 = vadd.f32 %v1968_v17, %v725_v19  ;;  %v599_v22 = vpop.f32.mrb[1].mxu0  ;;  %v727_v23 = vpop.f32.mrb[1].mxu1 }
 0x13d   :  { %v600_v24 = vpop.f32.mrb[2].mxu0  ;;  %v728_v25 = vpop.f32.mrb[2].mxu1 }
 0x13e   :  { %v601_v26 = vadd.f32 %v1968_v17, %v600_v24  ;;  %v729_v27 = vadd.f32 %v1968_v17, %v728_v25  ;;  %v602_v28 = vpop.f32.mrb[3].mxu0  ;;  %v730_v29 = vpop.f32.mrb[3].mxu1  ;;  %v852_v30 = vmax.f32 %v598_v20, 0.0  ;;  %v884_v31 = vmax.f32 %v726_v21, 0.0 }
 0x140   :  { %v853_v32 = vmax.f32 %v601_v26, 0.0  ;;  %v885_v33 = vmax.f32 %v729_v27, 0.0 }
 0x142   :  { %v1466_v34 = vpack.c.bf16 %v853_v32, %v852_v30  ;;  %v1546_v35 = vpack.c.bf16 %v885_v33, %v884_v31 }
 0x143   :  { %v605_v36 = vpop.f32.mrb[4].mxu0  ;;  %v733_v37 = vpop.f32.mrb[4].mxu1 }
 0x144   :  { %1467 = vst [vmem:[#allocation7] sm:$0xff] %v1466_v34   ;;  %1638 = vst [vmem:[#allocation7 + $0x80] sm:$0xff] %v1546_v35   ;;  %v606_v38 = vadd.f32 %v1968_v17, %v605_v36  ;;  %v734_v39 = vadd.f32 %v1968_v17, %v733_v37  ;;  %v607_v40 = vpop.f32.mrb[5].mxu0  ;;  %v735_v41 = vpop.f32.mrb[5].mxu1 }
 0x145   :  { %v608_v42 = vpop.f32.mrb[6].mxu0  ;;  %v736_v43 = vpop.f32.mrb[6].mxu1 }
 0x146   :  { %v609_v44 = vadd.f32 %v1968_v17, %v608_v42  ;;  %v737_v45 = vadd.f32 %v1968_v17, %v736_v43  ;;  %v610_v46 = vpop.f32.mrb[7].mxu0  ;;  %v738_v47 = vpop.f32.mrb[7].mxu1  ;;  %v854_v48 = vmax.f32 %v606_v38, 0.0  ;;  %v886_v49 = vmax.f32 %v734_v39, 0.0 }
 0x148   :  { %v855_v50 = vmax.f32 %v609_v44, 0.0  ;;  %v887_v51 = vmax.f32 %v737_v45, 0.0 }
 0x14a   :  { %v1471_v52 = vpack.c.bf16 %v855_v50, %v854_v48  ;;  %v1551_v53 = vpack.c.bf16 %v887_v51, %v886_v49 }
 0x14b   :  { %v613_v54 = vpop.f32.mrb[8].mxu0  ;;  %v741_v55 = vpop.f32.mrb[8].mxu1 }
 0x14c   :  { %1623 = vst [vmem:[#allocation7 + $0x8] sm:$0xff] %v1471_v52   ;;  %1639 = vst [vmem:[#allocation7 + $0x88] sm:$0xff] %v1551_v53   ;;  %v614_v56 = vadd.f32 %v1968_v17, %v613_v54  ;;  %v742_v57 = vadd.f32 %v1968_v17, %v741_v55  ;;  %v615_v58 = vpop.f32.mrb[9].mxu0  ;;  %v743_v59 = vpop.f32.mrb[9].mxu1 }
 0x14d   :  { %v616_v60 = vpop.f32.mrb[10].mxu0  ;;  %v744_v61 = vpop.f32.mrb[10].mxu1 }
 0x14e   :  { %v617_v62 = vadd.f32 %v1968_v17, %v616_v60  ;;  %v745_v63 = vadd.f32 %v1968_v17, %v744_v61  ;;  %v618_v0 = vpop.f32.mrb[11].mxu0  ;;  %v746_v1 = vpop.f32.mrb[11].mxu1  ;;  %v856_v2 = vmax.f32 %v614_v56, 0.0  ;;  %v888_v3 = vmax.f32 %v742_v57, 0.0 }
 0x150   :  { %v857_v4 = vmax.f32 %v617_v62, 0.0  ;;  %v889_v5 = vmax.f32 %v745_v63, 0.0 }
 0x152   :  { %v1476_v6 = vpack.c.bf16 %v857_v4, %v856_v2  ;;  %v1556_v7 = vpack.c.bf16 %v889_v5, %v888_v3 }
 0x153   :  { %v621_v8 = vpop.f32.mrb[12].mxu0  ;;  %v749_v9 = vpop.f32.mrb[12].mxu1 }
 0x154   :  { %1624 = vst [vmem:[#allocation7 + $0x10] sm:$0xff] %v1476_v6   ;;  %1640 = vst [vmem:[#allocation7 + $0x90] sm:$0xff] %v1556_v7   ;;  %v622_v10 = vadd.f32 %v1968_v17, %v621_v8  ;;  %v750_v11 = vadd.f32 %v1968_v17, %v749_v9  ;;  %v623_v12 = vpop.f32.mrb[13].mxu0  ;;  %v751_v13 = vpop.f32.mrb[13].mxu1 }
 0x155   :  { %v624_v14 = vpop.f32.mrb[14].mxu0  ;;  %v752_v15 = vpop.f32.mrb[14].mxu1 }
 0x156   :  { %v625_v16 = vadd.f32 %v1968_v17, %v624_v14  ;;  %v753_v18 = vadd.f32 %v1968_v17, %v752_v15  ;;  %v626_v19 = vpop.f32.mrb[15].mxu0  ;;  %v754_v20 = vpop.f32.mrb[15].mxu1  ;;  %v858_v21 = vmax.f32 %v622_v10, 0.0  ;;  %v890_v22 = vmax.f32 %v750_v11, 0.0 }
 0x158   :  { %v859_v23 = vmax.f32 %v625_v16, 0.0  ;;  %v891_v24 = vmax.f32 %v753_v18, 0.0 }
 0x15a   :  { %v1481_v25 = vpack.c.bf16 %v859_v23, %v858_v21  ;;  %v1561_v26 = vpack.c.bf16 %v891_v24, %v890_v22 }
 0x15b   :  { %v629_v27 = vpop.f32.mrb[16].mxu0  ;;  %v757_v28 = vpop.f32.mrb[16].mxu1 }
 0x15c   :  { %1625 = vst [vmem:[#allocation7 + $0x18] sm:$0xff] %v1481_v25   ;;  %1641 = vst [vmem:[#allocation7 + $0x98] sm:$0xff] %v1561_v26   ;;  %v630_v29 = vadd.f32 %v1968_v17, %v629_v27  ;;  %v758_v30 = vadd.f32 %v1968_v17, %v757_v28  ;;  %v631_v31 = vpop.f32.mrb[17].mxu0  ;;  %v759_v32 = vpop.f32.mrb[17].mxu1 }
 0x15d   :  { %v632_v33 = vpop.f32.mrb[18].mxu0  ;;  %v760_v34 = vpop.f32.mrb[18].mxu1 }
 0x15e   :  { %v633_v35 = vadd.f32 %v1968_v17, %v632_v33  ;;  %v761_v36 = vadd.f32 %v1968_v17, %v760_v34  ;;  %v634_v37 = vpop.f32.mrb[19].mxu0  ;;  %v762_v38 = vpop.f32.mrb[19].mxu1  ;;  %v860_v39 = vmax.f32 %v630_v29, 0.0  ;;  %v892_v40 = vmax.f32 %v758_v30, 0.0 }
 0x160   :  { %v861_v41 = vmax.f32 %v633_v35, 0.0  ;;  %v893_v42 = vmax.f32 %v761_v36, 0.0 }
 0x162   :  { %v1486_v43 = vpack.c.bf16 %v861_v41, %v860_v39  ;;  %v1566_v44 = vpack.c.bf16 %v893_v42, %v892_v40 }
 0x163   :  { %v637_v45 = vpop.f32.mrb[20].mxu0  ;;  %v765_v46 = vpop.f32.mrb[20].mxu1 }
 0x164   :  { %1626 = vst [vmem:[#allocation7 + $0x20] sm:$0xff] %v1486_v43   ;;  %1642 = vst [vmem:[#allocation7 + $0xa0] sm:$0xff] %v1566_v44   ;;  %v638_v47 = vadd.f32 %v1968_v17, %v637_v45  ;;  %v766_v48 = vadd.f32 %v1968_v17, %v765_v46  ;;  %v639_v49 = vpop.f32.mrb[21].mxu0  ;;  %v767_v50 = vpop.f32.mrb[21].mxu1 }
 0x165   :  { %v640_v51 = vpop.f32.mrb[22].mxu0  ;;  %v768_v52 = vpop.f32.mrb[22].mxu1 }
 0x166   :  { %v641_v53 = vadd.f32 %v1968_v17, %v640_v51  ;;  %v769_v54 = vadd.f32 %v1968_v17, %v768_v52  ;;  %v642_v55 = vpop.f32.mrb[23].mxu0  ;;  %v770_v56 = vpop.f32.mrb[23].mxu1  ;;  %v862_v57 = vmax.f32 %v638_v47, 0.0  ;;  %v894_v58 = vmax.f32 %v766_v48, 0.0 }
 0x168   :  { %v863_v59 = vmax.f32 %v641_v53, 0.0  ;;  %v895_v60 = vmax.f32 %v769_v54, 0.0 }
 0x16a   :  { %v1491_v61 = vpack.c.bf16 %v863_v59, %v862_v57  ;;  %v1571_v62 = vpack.c.bf16 %v895_v60, %v894_v58 }
 0x16b   :  { %v645_v63 = vpop.f32.mrb[24].mxu0  ;;  %v773_v0 = vpop.f32.mrb[24].mxu1 }
 0x16c   :  { %1627 = vst [vmem:[#allocation7 + $0x28] sm:$0xff] %v1491_v61   ;;  %1643 = vst [vmem:[#allocation7 + $0xa8] sm:$0xff] %v1571_v62   ;;  %v646_v1 = vadd.f32 %v1968_v17, %v645_v63  ;;  %v774_v2 = vadd.f32 %v1968_v17, %v773_v0  ;;  %v647_v3 = vpop.f32.mrb[25].mxu0  ;;  %v775_v4 = vpop.f32.mrb[25].mxu1 }
 0x16d   :  { %v648_v5 = vpop.f32.mrb[26].mxu0  ;;  %v776_v6 = vpop.f32.mrb[26].mxu1 }
 0x16e   :  { %v649_v7 = vadd.f32 %v1968_v17, %v648_v5  ;;  %v777_v8 = vadd.f32 %v1968_v17, %v776_v6  ;;  %v650_v9 = vpop.f32.mrb[27].mxu0  ;;  %v778_v10 = vpop.f32.mrb[27].mxu1  ;;  %v864_v11 = vmax.f32 %v646_v1, 0.0  ;;  %v896_v12 = vmax.f32 %v774_v2, 0.0 }
 0x170   :  { %v865_v13 = vmax.f32 %v649_v7, 0.0  ;;  %v897_v14 = vmax.f32 %v777_v8, 0.0 }
 0x172   :  { %v1496_v15 = vpack.c.bf16 %v865_v13, %v864_v11  ;;  %v1576_v16 = vpack.c.bf16 %v897_v14, %v896_v12 }
 0x173   :  { %v653_v18 = vpop.f32.mrb[28].mxu0  ;;  %v781_v19 = vpop.f32.mrb[28].mxu1 }
 0x174   :  { %1628 = vst [vmem:[#allocation7 + $0x30] sm:$0xff] %v1496_v15   ;;  %1644 = vst [vmem:[#allocation7 + $0xb0] sm:$0xff] %v1576_v16   ;;  %v654_v20 = vadd.f32 %v1968_v17, %v653_v18  ;;  %v782_v21 = vadd.f32 %v1968_v17, %v781_v19  ;;  %v655_v22 = vpop.f32.mrb[29].mxu0  ;;  %v783_v23 = vpop.f32.mrb[29].mxu1 }
 0x175   :  { %v656_v24 = vpop.f32.mrb[30].mxu0  ;;  %v784_v25 = vpop.f32.mrb[30].mxu1 }
 0x176   :  { %v657_v26 = vadd.f32 %v1968_v17, %v656_v24  ;;  %v785_v27 = vadd.f32 %v1968_v17, %v784_v25  ;;  %v658_v28 = vpop.f32.mrb[31].mxu0  ;;  %v786_v29 = vpop.f32.mrb[31].mxu1  ;;  %v866_v30 = vmax.f32 %v654_v20, 0.0  ;;  %v898_v31 = vmax.f32 %v782_v21, 0.0 }
 0x178   :  { %v867_v32 = vmax.f32 %v657_v26, 0.0  ;;  %v899_v33 = vmax.f32 %v785_v27, 0.0 }
 0x17a   :  { %v1501_v34 = vpack.c.bf16 %v867_v32, %v866_v30  ;;  %v1581_v35 = vpack.c.bf16 %v899_v33, %v898_v31 }
 0x17b   :  { %v661_v36 = vpop.f32.mrb[32].mxu0  ;;  %v789_v37 = vpop.f32.mrb[32].mxu1 }
 0x17c   :  { %1629 = vst [vmem:[#allocation7 + $0x38] sm:$0xff] %v1501_v34   ;;  %1645 = vst [vmem:[#allocation7 + $0xb8] sm:$0xff] %v1581_v35   ;;  %v662_v38 = vadd.f32 %v1968_v17, %v661_v36  ;;  %v790_v39 = vadd.f32 %v1968_v17, %v789_v37  ;;  %v663_v40 = vpop.f32.mrb[33].mxu0  ;;  %v791_v41 = vpop.f32.mrb[33].mxu1 }
 0x17d   :  { %v664_v42 = vpop.f32.mrb[34].mxu0  ;;  %v792_v43 = vpop.f32.mrb[34].mxu1 }
 0x17e   :  { %v665_v44 = vadd.f32 %v1968_v17, %v664_v42  ;;  %v793_v45 = vadd.f32 %v1968_v17, %v792_v43  ;;  %v666_v46 = vpop.f32.mrb[35].mxu0  ;;  %v794_v47 = vpop.f32.mrb[35].mxu1  ;;  %v868_v48 = vmax.f32 %v662_v38, 0.0  ;;  %v900_v49 = vmax.f32 %v790_v39, 0.0 }
 0x180   :  { %v869_v50 = vmax.f32 %v665_v44, 0.0  ;;  %v901_v51 = vmax.f32 %v793_v45, 0.0 }
 0x182   :  { %v1506_v52 = vpack.c.bf16 %v869_v50, %v868_v48  ;;  %v1586_v53 = vpack.c.bf16 %v901_v51, %v900_v49 }
 0x183   :  { %v669_v54 = vpop.f32.mrb[36].mxu0  ;;  %v797_v55 = vpop.f32.mrb[36].mxu1 }
 0x184   :  { %1630 = vst [vmem:[#allocation7 + $0x40] sm:$0xff] %v1506_v52   ;;  %1646 = vst [vmem:[#allocation7 + $0xc0] sm:$0xff] %v1586_v53   ;;  %v670_v56 = vadd.f32 %v1968_v17, %v669_v54  ;;  %v798_v57 = vadd.f32 %v1968_v17, %v797_v55  ;;  %v671_v58 = vpop.f32.mrb[37].mxu0  ;;  %v799_v59 = vpop.f32.mrb[37].mxu1 }
 0x185   :  { %v672_v60 = vpop.f32.mrb[38].mxu0  ;;  %v800_v61 = vpop.f32.mrb[38].mxu1 }
 0x186   :  { %v673_v62 = vadd.f32 %v1968_v17, %v672_v60  ;;  %v801_v63 = vadd.f32 %v1968_v17, %v800_v61  ;;  %v674_v0 = vpop.f32.mrb[39].mxu0  ;;  %v802_v1 = vpop.f32.mrb[39].mxu1  ;;  %v870_v2 = vmax.f32 %v670_v56, 0.0  ;;  %v902_v3 = vmax.f32 %v798_v57, 0.0 }
 0x188   :  { %v871_v4 = vmax.f32 %v673_v62, 0.0  ;;  %v903_v5 = vmax.f32 %v801_v63, 0.0 }
 0x18a   :  { %v1511_v6 = vpack.c.bf16 %v871_v4, %v870_v2  ;;  %v1591_v7 = vpack.c.bf16 %v903_v5, %v902_v3 }
 0x18b   :  { %v677_v8 = vpop.f32.mrb[40].mxu0  ;;  %v805_v9 = vpop.f32.mrb[40].mxu1 }
 0x18c   :  { %1631 = vst [vmem:[#allocation7 + $0x48] sm:$0xff] %v1511_v6   ;;  %1647 = vst [vmem:[#allocation7 + $0xc8] sm:$0xff] %v1591_v7   ;;  %v678_v10 = vadd.f32 %v1968_v17, %v677_v8  ;;  %v806_v11 = vadd.f32 %v1968_v17, %v805_v9  ;;  %v679_v12 = vpop.f32.mrb[41].mxu0  ;;  %v807_v13 = vpop.f32.mrb[41].mxu1 }
 0x18d   :  { %v680_v14 = vpop.f32.mrb[42].mxu0  ;;  %v808_v15 = vpop.f32.mrb[42].mxu1 }
 0x18e   :  { %v681_v16 = vadd.f32 %v1968_v17, %v680_v14  ;;  %v809_v18 = vadd.f32 %v1968_v17, %v808_v15  ;;  %v682_v19 = vpop.f32.mrb[43].mxu0  ;;  %v810_v20 = vpop.f32.mrb[43].mxu1  ;;  %v872_v21 = vmax.f32 %v678_v10, 0.0  ;;  %v904_v22 = vmax.f32 %v806_v11, 0.0 }
 0x190   :  { %v873_v23 = vmax.f32 %v681_v16, 0.0  ;;  %v905_v24 = vmax.f32 %v809_v18, 0.0 }
 0x192   :  { %v1516_v25 = vpack.c.bf16 %v873_v23, %v872_v21  ;;  %v1596_v26 = vpack.c.bf16 %v905_v24, %v904_v22 }
 0x193   :  { %v685_v27 = vpop.f32.mrb[44].mxu0  ;;  %v813_v28 = vpop.f32.mrb[44].mxu1 }
 0x194   :  { %1632 = vst [vmem:[#allocation7 + $0x50] sm:$0xff] %v1516_v25   ;;  %1648 = vst [vmem:[#allocation7 + $0xd0] sm:$0xff] %v1596_v26   ;;  %v686_v29 = vadd.f32 %v1968_v17, %v685_v27  ;;  %v814_v30 = vadd.f32 %v1968_v17, %v813_v28  ;;  %v687_v31 = vpop.f32.mrb[45].mxu0  ;;  %v815_v32 = vpop.f32.mrb[45].mxu1 }
 0x195   :  { %v688_v33 = vpop.f32.mrb[46].mxu0  ;;  %v816_v34 = vpop.f32.mrb[46].mxu1 }
 0x196   :  { %v689_v35 = vadd.f32 %v1968_v17, %v688_v33  ;;  %v817_v36 = vadd.f32 %v1968_v17, %v816_v34  ;;  %v690_v37 = vpop.f32.mrb[47].mxu0  ;;  %v818_v38 = vpop.f32.mrb[47].mxu1  ;;  %v874_v39 = vmax.f32 %v686_v29, 0.0  ;;  %v906_v40 = vmax.f32 %v814_v30, 0.0 }
 0x198   :  { %v875_v41 = vmax.f32 %v689_v35, 0.0  ;;  %v907_v42 = vmax.f32 %v817_v36, 0.0 }
 0x19a   :  { %v1521_v43 = vpack.c.bf16 %v875_v41, %v874_v39  ;;  %v1601_v44 = vpack.c.bf16 %v907_v42, %v906_v40 }
 0x19b   :  { %v693_v45 = vpop.f32.mrb[48].mxu0  ;;  %v821_v46 = vpop.f32.mrb[48].mxu1 }
 0x19c   :  { %1633 = vst [vmem:[#allocation7 + $0x58] sm:$0xff] %v1521_v43   ;;  %1649 = vst [vmem:[#allocation7 + $0xd8] sm:$0xff] %v1601_v44   ;;  %v694_v47 = vadd.f32 %v1968_v17, %v693_v45  ;;  %v822_v48 = vadd.f32 %v1968_v17, %v821_v46  ;;  %v695_v49 = vpop.f32.mrb[49].mxu0  ;;  %v823_v50 = vpop.f32.mrb[49].mxu1 }
 0x19d   :  { %v696_v51 = vpop.f32.mrb[50].mxu0  ;;  %v824_v52 = vpop.f32.mrb[50].mxu1 }
 0x19e   :  { %v697_v53 = vadd.f32 %v1968_v17, %v696_v51  ;;  %v825_v54 = vadd.f32 %v1968_v17, %v824_v52  ;;  %v698_v55 = vpop.f32.mrb[51].mxu0  ;;  %v826_v56 = vpop.f32.mrb[51].mxu1  ;;  %v876_v57 = vmax.f32 %v694_v47, 0.0  ;;  %v908_v58 = vmax.f32 %v822_v48, 0.0 }
 0x1a0   :  { %v877_v59 = vmax.f32 %v697_v53, 0.0  ;;  %v909_v60 = vmax.f32 %v825_v54, 0.0 }
 0x1a2   :  { %v1526_v61 = vpack.c.bf16 %v877_v59, %v876_v57  ;;  %v1606_v62 = vpack.c.bf16 %v909_v60, %v908_v58 }
 0x1a3   :  { %v701_v63 = vpop.f32.mrb[52].mxu0  ;;  %v829_v0 = vpop.f32.mrb[52].mxu1 }
 0x1a4   :  { %1634 = vst [vmem:[#allocation7 + $0x60] sm:$0xff] %v1526_v61   ;;  %1650 = vst [vmem:[#allocation7 + $0xe0] sm:$0xff] %v1606_v62   ;;  %v702_v1 = vadd.f32 %v1968_v17, %v701_v63  ;;  %v830_v2 = vadd.f32 %v1968_v17, %v829_v0  ;;  %v703_v3 = vpop.f32.mrb[53].mxu0  ;;  %v831_v4 = vpop.f32.mrb[53].mxu1 }
 0x1a5   :  { %v704_v5 = vpop.f32.mrb[54].mxu0  ;;  %v832_v6 = vpop.f32.mrb[54].mxu1 }
 0x1a6   :  { %v705_v7 = vadd.f32 %v1968_v17, %v704_v5  ;;  %v833_v8 = vadd.f32 %v1968_v17, %v832_v6  ;;  %v706_v9 = vpop.f32.mrb[55].mxu0  ;;  %v834_v10 = vpop.f32.mrb[55].mxu1  ;;  %v878_v11 = vmax.f32 %v702_v1, 0.0  ;;  %v910_v12 = vmax.f32 %v830_v2, 0.0 }
 0x1a8   :  { %v879_v13 = vmax.f32 %v705_v7, 0.0  ;;  %v911_v14 = vmax.f32 %v833_v8, 0.0 }
 0x1aa   :  { %v1531_v15 = vpack.c.bf16 %v879_v13, %v878_v11  ;;  %v1611_v16 = vpack.c.bf16 %v911_v14, %v910_v12 }
 0x1ab   :  { %v709_v18 = vpop.f32.mrb[56].mxu0  ;;  %v837_v19 = vpop.f32.mrb[56].mxu1 }
 0x1ac   :  { %1635 = vst [vmem:[#allocation7 + $0x68] sm:$0xff] %v1531_v15   ;;  %1651 = vst [vmem:[#allocation7 + $0xe8] sm:$0xff] %v1611_v16   ;;  %v710_v20 = vadd.f32 %v1968_v17, %v709_v18  ;;  %v838_v21 = vadd.f32 %v1968_v17, %v837_v19  ;;  %v711_v22 = vpop.f32.mrb[57].mxu0  ;;  %v839_v23 = vpop.f32.mrb[57].mxu1 }
 0x1ad   :  { %v712_v24 = vpop.f32.mrb[58].mxu0  ;;  %v840_v25 = vpop.f32.mrb[58].mxu1 }
 0x1ae   :  { %v713_v26 = vadd.f32 %v1968_v17, %v712_v24  ;;  %v841_v27 = vadd.f32 %v1968_v17, %v840_v25  ;;  %v714_v28 = vpop.f32.mrb[59].mxu0  ;;  %v842_v29 = vpop.f32.mrb[59].mxu1  ;;  %v880_v30 = vmax.f32 %v710_v20, 0.0  ;;  %v912_v31 = vmax.f32 %v838_v21, 0.0 }
 0x1b0   :  { %v881_v32 = vmax.f32 %v713_v26, 0.0  ;;  %v913_v33 = vmax.f32 %v841_v27, 0.0 }
 0x1b2   :  { %v1536_v34 = vpack.c.bf16 %v881_v32, %v880_v30  ;;  %v1616_v35 = vpack.c.bf16 %v913_v33, %v912_v31 }
 0x1b3   :  { %v717_v36 = vpop.f32.mrb[60].mxu0  ;;  %v845_v37 = vpop.f32.mrb[60].mxu1 }
 0x1b4   :  { %1636 = vst [vmem:[#allocation7 + $0x70] sm:$0xff] %v1536_v34   ;;  %1652 = vst [vmem:[#allocation7 + $0xf0] sm:$0xff] %v1616_v35   ;;  %v718_v38 = vadd.f32 %v1968_v17, %v717_v36  ;;  %v846_v39 = vadd.f32 %v1968_v17, %v845_v37  ;;  %v719_v40 = vpop.f32.mrb[61].mxu0  ;;  %v847_v41 = vpop.f32.mrb[61].mxu1 }
 0x1b5   :  { %v720_v42 = vpop.f32.mrb[62].mxu0  ;;  %v848_v43 = vpop.f32.mrb[62].mxu1 }
 0x1b6   :  { %v721_v44 = vadd.f32 %v1968_v17, %v720_v42  ;;  %v849_v45 = vadd.f32 %v1968_v17, %v848_v43  ;;  %v722_v46 = vpop.f32.mrb[63].mxu0  ;;  %v850_v47 = vpop.f32.mrb[63].mxu1  ;;  %v882_v48 = vmax.f32 %v718_v38, 0.0  ;;  %v914_v49 = vmax.f32 %v846_v39, 0.0 }
 0x1b8   :  { %v883_v50 = vmax.f32 %v721_v44, 0.0  ;;  %v915_v51 = vmax.f32 %v849_v45, 0.0 }
 0x1ba   :  { %v1541_v52 = vpack.c.bf16 %v883_v50, %v882_v48  ;;  %v1621_v53 = vpack.c.bf16 %v915_v51, %v914_v49 }
 0x1bc   :  { %1637 = vst [vmem:[#allocation7 + $0x78] sm:$0xff] %v1541_v52   ;;  %1653 = vst [vmem:[#allocation7 + $0xf8] sm:$0xff] %v1621_v53  }
 0x1bd   :  { %1861 = shalt.err (!%p1858_p6)
}
 0x1be   :  { %s1862_s17 = scalar_lea.hbm %s2052_s3, 4096 }
 0x1bf   :  { %p1863_p7 = scmp.ne.s32.totalorder %s2052_s3, %s1862_s17  ;;  %p1866_p8 = scmp.lt.u32.totalorder %s1862_s17, %s2052_s3 }
 0x1c1   :  { %p1868_p9 = pnand %p1866_p8, %p1863_p7 }
 0x1c3   :  { %1871 = shalt.err (!%p1868_p9)
}
 0x1c4   :  { %1247 = dma.vmem_to_hbm [thread:$0]  %s1242_s13, 4096, %s2052_s3, [#allocation4], %s1882_s0, %s1882_s0, %s1883_s9  }
 0x1c5   :  { %1876 = dma.done.wait [#allocation4], 4096  }
 0x1c6   :  { %1877 = vsyncadd [#allocation4], 4294963200 }
 0x1c7   :  { %1251 = vsyncpa [#allocation3], 1 }
 0x1c8   :  { %1252 = vsyncpa [#allocation6], 1 }
 0x1c9   :  { %1253 = vsyncpa [#allocation4], 1 }

</bundles_post_ra>
